<compile_context>
chip_gen: v5e
topology: v5e:2x2
jax: 0.10.0
libtpu: 0.0.40
codegen_flags: <defaults>
</compile_context>

<pallas_src>
import functools

import jax
import jax.numpy as jnp
from jax.experimental import pallas as pl
from jax.experimental.pallas import tpu as pltpu


def _round_up(v, m):
    return ((v + m - 1) // m) * m


def _msgru_kernel(x_ref, h_ref, wx_ref, whrz_ref, whh_ref, b_ref, out_ref,
                  *, hidden):
    H = hidden
    x = x_ref[...]                         # (tm, I)   native dtype
    h = h_ref[...]                         # (tm, H)   native dtype
    h32 = h.astype(jnp.float32)

    # Fused x-path: (tm, I) @ (I, 3H) -> f32 (tm, 3H)
    gx = jnp.dot(x, wx_ref[...], preferred_element_type=jnp.float32)
    # Fused h-path for r/z: (tm, H) @ (H, 2H) -> f32 (tm, 2H)
    gh = jnp.dot(h, whrz_ref[...], preferred_element_type=jnp.float32)

    b = b_ref[...]                         # (1, 3H) f32: [b_r | b_z | b_h]

    rz = jax.nn.sigmoid(gx[:, :2 * H] + gh + b[:, :2 * H])
    r = rz[:, :H]
    z = rz[:, H:]

    rh = (r * h32).astype(h.dtype)         # keep MXU operand in native dtype
    h_cand = jnp.tanh(
        gx[:, 2 * H:]
        + jnp.dot(rh, whh_ref[...], preferred_element_type=jnp.float32)
        + b[:, 2 * H:])

    out_ref[...] = (z * h32 + (1.0 - z) * h_cand).astype(out_ref.dtype)


def msgru_forward(inputs, states, w_rz, b_rz, w_h, b_h, *, block_rows=1024):
    """MSGRU cell.

    inputs: (B, N, I)   states: (B, N, H)
    w_rz:   (2H, I+H)   b_rz:   (2H,)        (PyTorch nn.Linear layout)
    w_h:    (H,  I+H)   b_h:    (H,)
    returns (new_state, new_state), each (B, N, H)
    """
    B, N, I = inputs.shape
    _, _, H = states.shape
    compute_dtype = inputs.dtype

    # --- tiny wrapper-side weight re-layout / fusion (no big HBM traffic) --
    wr, wz = w_rz[:H], w_rz[H:]                              # r-gate / z-gate rows
    # x-path weights fused:  (I, 3H)  columns = [r | z | h]
    wx = jnp.concatenate([wr[:, :I], wz[:, :I], w_h[:, :I]], axis=0).T
    # h-path weights for r/z fused:  (H, 2H)
    wh_rz = jnp.concatenate([wr[:, I:], wz[:, I:]], axis=0).T
    # h-path weight for candidate:   (H, H)
    wh_h = w_h[:, I:].T
    # fused bias row (f32, added to f32 accumulators):  (1, 3H) = [b_r | b_z | b_h]
    b_fused = jnp.concatenate([b_rz, b_h]).reshape(1, 3 * H).astype(jnp.float32)

    wx = wx.astype(compute_dtype)
    wh_rz = wh_rz.astype(compute_dtype)
    wh_h = wh_h.astype(compute_dtype)

    # --- fuse (B, N) into one row axis and tile it -------------------------
    M = B * N
    x2 = inputs.reshape(M, I)
    h2 = states.reshape(M, H)

    itemsize = jnp.dtype(compute_dtype).itemsize
    # Conservative VMEM budget for the double-buffered row tiles: fits the
    # scoped defaults on v5e (16 MiB), v6e/v7x (32 MiB) with headroom.
    vmem_budget = 8 * 1024 * 1024
    per_row_bytes = 2 * (I + 2 * H) * itemsize          # x + h in, out (x2 buffers)
    tm_cap = max(8, (vmem_budget // max(per_row_bytes, 1)) // 8 * 8)
    # >= 2 grid steps when possible so v7x's 2 TensorCores both get work.
    half = _round_up(-(-M // 2), 8)
    tm = min(block_rows, half, tm_cap)
    tm = max(8, tm - (tm % 8))                           # sublane-aligned

    grid = (pl.cdiv(M, tm),)                             # ragged last block OK

    def _const(shape):
        return pl.BlockSpec(shape, lambda i: (0, 0))

    flops = 2 * M * (I * 3 * H + H * 2 * H + H * H) + 10 * M * H
    bytes_accessed = (M * I + 2 * M * H) * itemsize \
        + (3 * (I + H) * H) * itemsize + 3 * H * 4

    out = pl.pallas_call(
        functools.partial(_msgru_kernel, hidden=H),
        out_shape=jax.ShapeDtypeStruct((M, H), states.dtype),
        grid=grid,
        in_specs=[
            pl.BlockSpec((tm, I), lambda i: (i, 0)),     # input rows
            pl.BlockSpec((tm, H), lambda i: (i, 0)),     # state rows
            _const((I, 3 * H)),                          # fused x-path weights
            _const((H, 2 * H)),                          # fused h-path (r/z) weights
            _const((H, H)),                              # candidate h-path weights
            _const((1, 3 * H)),                          # fused bias (f32)
        ],
        out_specs=pl.BlockSpec((tm, H), lambda i: (i, 0)),
        compiler_params=pltpu.CompilerParams(
            dimension_semantics=("parallel",)),
        cost_estimate=pl.CostEstimate(
            flops=int(flops),
            transcendentals=int(5 * M * H),
            bytes_accessed=int(bytes_accessed)),
    )(x2, h2, wx, wh_rz, wh_h, b_fused)

    new_state = out.reshape(B, N, H)
    return new_state, new_state


def _msgru_ref(inputs, states, w_rz, b_rz, w_h, b_h):
    """Pure-JAX reference mirroring the PyTorch forward exactly."""
    H = states.shape[-1]
    xh = jnp.concatenate([inputs, states], axis=-1)
    rz = jax.nn.sigmoid(xh @ w_rz.T + b_rz)
    r, z = rz[..., :H], rz[..., H:]
    xh2 = jnp.concatenate([inputs, r * states], axis=-1)
    h_cand = jnp.tanh(xh2 @ w_h.T + b_h)
    new_state = z * states + (1.0 - z) * h_cand
    return new_state, new_state


if __name__ == "__main__":
    key = jax.random.PRNGKey(0)
    B, N = 2, 16          # batch, nodes
    I, H = 16, 32         # input_size, dg_hidden_size

    k1, k2, k3, k4, k5, k6 = jax.random.split(key, 6)
    inputs = jax.random.normal(k1, (B, N, I), dtype=jnp.float32)
    states = jax.random.normal(k2, (B, N, H), dtype=jnp.float32)
    w_rz = jax.random.normal(k3, (2 * H, I + H), dtype=jnp.float32) * 0.1
    b_rz = jax.random.normal(k4, (2 * H,), dtype=jnp.float32) * 0.1
    w_h = jax.random.normal(k5, (H, I + H), dtype=jnp.float32) * 0.1
    b_h = jax.random.normal(k6, (H,), dtype=jnp.float32) * 0.1

    new_state, new_state2 = msgru_forward(inputs, states, w_rz, b_rz, w_h, b_h)
    jax.block_until_ready((new_state, new_state2))

    ref_state, _ = _msgru_ref(inputs, states, w_rz, b_rz, w_h, b_h)
    assert new_state.shape == (B, N, H)
    assert jnp.allclose(new_state, ref_state, atol=1e-5, rtol=1e-5)
    assert jnp.allclose(new_state2, ref_state, atol=1e-5, rtol=1e-5)

    print("KERNEL_OK")
</pallas_src>

<mosaic_0001>
module attributes {stable_mosaic.version = 11 : i64} {
  func.func @_msgru_kernel(%arg0: i32, %arg1: memref<16x16xf32, #tpu.memory_space<vmem>>, %arg2: memref<16x32xf32, #tpu.memory_space<vmem>>, %arg3: memref<16x96xf32, #tpu.memory_space<vmem>>, %arg4: memref<32x64xf32, #tpu.memory_space<vmem>>, %arg5: memref<32x32xf32, #tpu.memory_space<vmem>>, %arg6: memref<1x96xf32, #tpu.memory_space<vmem>>, %arg7: memref<16x32xf32, #tpu.memory_space<vmem>>) attributes {dimension_semantics = [#tpu.dimension_semantics<parallel>], iteration_bounds = array<i64: 2>, scalar_prefetch = 0 : i64, scratch_operands = 0 : i64, tpu.core_type = #tpu.core_type<tc>, window_params = [{transform_indices = @transform_0, window_bounds = array<i64: 16, 16>}, {transform_indices = @transform_1, window_bounds = array<i64: 16, 32>}, {pipeline_mode = #tpu.pipeline_mode<synchronous>, transform_indices = @transform_2, window_bounds = array<i64: 16, 96>}, {pipeline_mode = #tpu.pipeline_mode<synchronous>, transform_indices = @transform_3, window_bounds = array<i64: 32, 64>}, {pipeline_mode = #tpu.pipeline_mode<synchronous>, transform_indices = @transform_4, window_bounds = array<i64: 32, 32>}, {pipeline_mode = #tpu.pipeline_mode<synchronous>, transform_indices = @transform_5, window_bounds = array<i64: 1, 96>}, {transform_indices = @transform_6, window_bounds = array<i64: 16, 32>}]} {
    %c0 = arith.constant 0 : index
    %c0_0 = arith.constant 0 : index
    %0 = vector.load %arg1[%c0, %c0_0] : memref<16x16xf32, #tpu.memory_space<vmem>>, vector<16x16xf32>
    %c0_1 = arith.constant 0 : index
    %c0_2 = arith.constant 0 : index
    %1 = vector.load %arg2[%c0_1, %c0_2] : memref<16x32xf32, #tpu.memory_space<vmem>>, vector<16x32xf32>
    %c0_3 = arith.constant 0 : index
    %c0_4 = arith.constant 0 : index
    %2 = vector.load %arg3[%c0_3, %c0_4] : memref<16x96xf32, #tpu.memory_space<vmem>>, vector<16x96xf32>
    %cst = arith.constant dense<0.000000e+00> : vector<16x96xf32>
    %3 = tpu.matmul %0, %2, %cst {dimension_numbers = #tpu.dot_dimension_numbers<[1], [0], [0], [1], [0, 0, 1, 1], [], []>} : vector<16x16xf32>, vector<16x96xf32>, vector<16x96xf32> -> vector<16x96xf32>
    %c0_5 = arith.constant 0 : index
    %c0_6 = arith.constant 0 : index
    %4 = vector.load %arg4[%c0_5, %c0_6] : memref<32x64xf32, #tpu.memory_space<vmem>>, vector<32x64xf32>
    %cst_7 = arith.constant dense<0.000000e+00> : vector<16x64xf32>
    %5 = tpu.matmul %1, %4, %cst_7 {dimension_numbers = #tpu.dot_dimension_numbers<[1], [0], [0], [1], [0, 0, 1, 1], [], []>} : vector<16x32xf32>, vector<32x64xf32>, vector<16x64xf32> -> vector<16x64xf32>
    %c0_8 = arith.constant 0 : index
    %c0_9 = arith.constant 0 : index
    %6 = vector.load %arg6[%c0_8, %c0_9] : memref<1x96xf32, #tpu.memory_space<vmem>>, vector<1x96xf32>
    %7 = vector.extract_strided_slice %3 {offsets = [0, 0], sizes = [16, 64], strides = [1, 1]} : vector<16x96xf32> to vector<16x64xf32>
    %8 = arith.addf %7, %5 : vector<16x64xf32>
    %9 = vector.extract_strided_slice %6 {offsets = [0, 0], sizes = [1, 64], strides = [1, 1]} : vector<1x96xf32> to vector<1x64xf32>
    %10 = vector.broadcast %9 : vector<1x64xf32> to vector<16x64xf32>
    %11 = arith.addf %8, %10 : vector<16x64xf32>
    %12 = arith.negf %11 : vector<16x64xf32>
    %13 = math.exp %12 : vector<16x64xf32>
    %cst_10 = arith.constant 1.000000e+00 : f32
    %14 = vector.broadcast %cst_10 : f32 to vector<16x64xf32>
    %15 = arith.addf %14, %13 : vector<16x64xf32>
    %16 = arith.divf %14, %15 : vector<16x64xf32>
    %17 = vector.extract_strided_slice %16 {offsets = [0, 0], sizes = [16, 32], strides = [1, 1]} : vector<16x64xf32> to vector<16x32xf32>
    %18 = vector.extract_strided_slice %16 {offsets = [0, 32], sizes = [16, 32], strides = [1, 1]} : vector<16x64xf32> to vector<16x32xf32>
    %19 = arith.mulf %17, %1 : vector<16x32xf32>
    %20 = vector.extract_strided_slice %3 {offsets = [0, 64], sizes = [16, 32], strides = [1, 1]} : vector<16x96xf32> to vector<16x32xf32>
    %c0_11 = arith.constant 0 : index
    %c0_12 = arith.constant 0 : index
    %21 = vector.load %arg5[%c0_11, %c0_12] : memref<32x32xf32, #tpu.memory_space<vmem>>, vector<32x32xf32>
    %cst_13 = arith.constant dense<0.000000e+00> : vector<16x32xf32>
    %22 = tpu.matmul %19, %21, %cst_13 {dimension_numbers = #tpu.dot_dimension_numbers<[1], [0], [0], [1], [0, 0, 1, 1], [], []>} : vector<16x32xf32>, vector<32x32xf32>, vector<16x32xf32> -> vector<16x32xf32>
    %23 = arith.addf %20, %22 : vector<16x32xf32>
    %24 = vector.extract_strided_slice %6 {offsets = [0, 64], sizes = [1, 32], strides = [1, 1]} : vector<1x96xf32> to vector<1x32xf32>
    %25 = vector.broadcast %24 : vector<1x32xf32> to vector<16x32xf32>
    %26 = arith.addf %23, %25 : vector<16x32xf32>
    %27 = math.tanh %26 : vector<16x32xf32>
    %28 = arith.mulf %18, %1 : vector<16x32xf32>
    %cst_14 = arith.constant 1.000000e+00 : f32
    %29 = vector.broadcast %cst_14 : f32 to vector<16x32xf32>
    %30 = arith.subf %29, %18 : vector<16x32xf32>
    %31 = arith.mulf %30, %27 : vector<16x32xf32>
    %32 = arith.addf %28, %31 : vector<16x32xf32>
    %c0_15 = arith.constant 0 : index
    %c0_16 = arith.constant 0 : index
    %33 = vector.load %arg7[%c0_15, %c0_16] : memref<16x32xf32, #tpu.memory_space<vmem>>, vector<16x32xf32>
    tpu.vector_store %arg7[%c0_15, %c0_16], %32 {strides = array<i32>} : memref<16x32xf32, #tpu.memory_space<vmem>>, vector<16x32xf32>,
    return
  }
  func.func @transform_0(%arg0: i32) -> (i32, i32) {
    %c0_i32 = arith.constant 0 : i32
    %c0_i32_0 = arith.constant 0 : i32
    return %arg0, %c0_i32 : i32, i32
  }
  func.func @transform_1(%arg0: i32) -> (i32, i32) {
    %c0_i32 = arith.constant 0 : i32
    %c0_i32_0 = arith.constant 0 : i32
    return %arg0, %c0_i32 : i32, i32
  }
  func.func @transform_2(%arg0: i32) -> (i32, i32) {
    %c0_i32 = arith.constant 0 : i32
    %c0_i32_0 = arith.constant 0 : i32
    %c0_i32_1 = arith.constant 0 : i32
    return %c0_i32, %c0_i32_0 : i32, i32
  }
  func.func @transform_3(%arg0: i32) -> (i32, i32) {
    %c0_i32 = arith.constant 0 : i32
    %c0_i32_0 = arith.constant 0 : i32
    %c0_i32_1 = arith.constant 0 : i32
    return %c0_i32, %c0_i32_0 : i32, i32
  }
  func.func @transform_4(%arg0: i32) -> (i32, i32) {
    %c0_i32 = arith.constant 0 : i32
    %c0_i32_0 = arith.constant 0 : i32
    %c0_i32_1 = arith.constant 0 : i32
    return %c0_i32, %c0_i32_0 : i32, i32
  }
  func.func @transform_5(%arg0: i32) -> (i32, i32) {
    %c0_i32 = arith.constant 0 : i32
    %c0_i32_0 = arith.constant 0 : i32
    %c0_i32_1 = arith.constant 0 : i32
    return %c0_i32, %c0_i32_0 : i32, i32
  }
  func.func @transform_6(%arg0: i32) -> (i32, i32) {
    %c0_i32 = arith.constant 0 : i32
    %c0_i32_0 = arith.constant 0 : i32
    return %arg0, %c0_i32 : i32, i32
  }
}

</mosaic_0001>

<bundles_post_ra>
// kernel: tpu_custom_call.1
= control target key start
LH: loop header
LB: loop body
LE: loop exit
PB: predicated region body
PF: predicated region fallthrough
CT: control target
= control target key end

     0   :  { %11 = vsyncpa [#allocation3], 0  ;;  %s1045_s0 = inlined_call_operand.vmem [shape: f32[32,16], index: 0, kind: input, shape index: {}]   ;;  %s1046_s1 = inlined_call_operand.vmem [shape: f32[32,32], index: 1, kind: input, shape index: {}]   ;;  %s1047_s2 = inlined_call_operand.vmem [shape: f32[16,96], index: 2, kind: input, shape index: {}]   ;;  %s1048_s3 = inlined_call_operand.hbm [shape: f32[32,64], index: 3, kind: input, shape index: {}]   ;;  %s1049_s4 = inlined_call_operand.hbm [shape: f32[32,32], index: 4, kind: input, shape index: {}]   ;;  %s1050_s5 = inlined_call_operand.vmem [shape: f32[1,96], index: 5, kind: input, shape index: {}]   ;;  %s1051_s6 = inlined_call_operand.hbm [shape: f32[32,32], index: 6, kind: output, shape index: {}]  }
   0x1   :  { %12 = vsyncpa [#allocation6], 0 }
   0x2   :  { %13 = vsyncpa [#allocation4], 0 }
   0x3   :  { %15 = vsyncpa [#allocation4 + $0x1], 0  ;;  %s905_s21 = smov 0   ;;  %s907_s22 = smov 0  }
   0x4   :  { %s909_s23 = smov 0   ;;  %s911_s24 = smov 0  }
   0x5 LB: > { %s926_s25 = sadd.s32 4294967295, %s859_s24   ;;  %s618_s26 = sadd.s32 4294967294, %s859_s24   ;;  %s859_s24 = sphi %s911_s24, %s1058_s24   ;;  %s855_s23 = sphi %s909_s23, %s1057_s23   ;;  %s851_s22 = sphi %s907_s22, %s1056_s22   ;;  %s847_s21 = sphi %s905_s21, %s1055_s21  }
   0x6   : > { %s930_s27 = sadd.s32 1, %s859_s24   ;;  %s164_s28 = sadd.s32 1, %s855_s23 }
   0x7   : > { %s161_s29 = ssub.s32 %s859_s24, %s930_s27  ;;  %p174_p0 = scmp.ne.s32.totalorder %s855_s23, %s851_s22 }
   0x8   : > { %p162_p1 = scmp.eq.s32.totalorder %s161_s29, 0  ;;  %p175_p2 = scmp.eq.s32.totalorder %s926_s25, 1 }
   0x9   : > { %p180_p3 = scmp.ne.s32.totalorder %s851_s22, %s847_s21  ;;  %p181_p4 = scmp.eq.s32.totalorder %s618_s26, 1 }
   0xa   : > { %s941_s30 = scalar_select %p162_p1, %s855_s23, %s164_s28  }
   0xb   : > { %p943_p5 = por %p175_p2, %p174_p0  ;;  %p947_p6 = por %p181_p4, %p180_p3 }
   0xc   : > { %p619_p7 = scmp.ge.s32.totalorder %s859_s24, 1  ;;  %p188_p8 = scmp.lt.s32.totalorder %s859_s24, 3 }
   0xd   : > { %p670_p9 = scmp.eq.s32.totalorder %s926_s25, 0  ;;  %s202_s12 = sshll.u32 %s1048_s3, 4  ;;  %s203_s12 = int_to_ptr.hbm [resolvable:$true] %s202_s12 }
   0xe   : > { %p954_p10 = pnand %p619_p7, %p188_p8  ;;  %s861_s13 = smov [#allocation2]  }
   0xf   : > { %s204_s14 = sshll.u32 %s861_s13, 4  ;;  %s216_s17 = sshll.u32 %s1049_s4, 4  ;;  %s205_s14 = int_to_ptr.vmem [resolvable:$true] %s204_s14  ;;  %s217_s17 = int_to_ptr.hbm [resolvable:$true] %s216_s17 }
  0x10   : > { %p659_p11 = pneg %p954_p10  ;;  %s862_s18 = smov 128  }
  0x11   : > { %s863_s19 = smov 8   ;;  %s864_s20 = smov [#allocation5]  }
  0x12   : > { %p660_p12 = pnand %p670_p9, %p659_p11  ;;  %s218_s26 = sshll.u32 %s864_s20, 4  ;;  %s219_s26 = int_to_ptr.vmem [resolvable:$true] %s218_s26 }
  0x13   : > { %255 = sbr.rel (%p954_p10) target bundleno = 676 (0x2a4), region = 44 }
  0x14   : > { %662 = dma.hbm_to_vmem [thread:$0]  (!%p660_p12), %s203_s12, 512, %s205_s14, [#allocation3], %s862_s18, %s862_s18, %s863_s19  }
  0x15   : > { %665 = dma.hbm_to_vmem [thread:$0]  (!%p660_p12), %s217_s17, 512, %s219_s26, [#allocation6], %s862_s18, %s862_s18, %s863_s19  }
  0x18   : > { %834 = dma.done.wait (%p670_p9), [#allocation3], 512  }
  0x19   : > { %836 = vsyncadd (%p670_p9), [#allocation3], 4294966784 }
  0x1a   : > { %838 = dma.done.wait (%p670_p9), [#allocation6], 512  }
  0x1b   : > { %840 = vsyncadd (%p670_p9), [#allocation6], 4294966784  ;;  %s627_s28 = sshll.u32 %s926_s25, 1  ;;  %v348_v0 = vld [vmem:[#allocation2 + $0x18] sm:$0xff]  ;;  %v314_v1 = vld [vmem:[%s1047_s2 + $0x8] sm:$0xff]  ;;  %vm315_vm0 = vcmask 130048  }
  0x1c   : > { %p297_p13 = scmp.lt.s32.totalorder %s627_s28, 3  ;;  %v347_v2 = vld [vmem:[#allocation2 + $0x10] sm:$0xff]  ;;  %368 = vmatpush.msra.mxu1 %v348_v0  ;;  %645 = vmatpush.msra.mxu3 %v348_v0  ;;  %v313_v3 = vld [vmem:[%s1047_s2] sm:$0xff]  ;;  %v346_v4 = vld [vmem:[#allocation2 + $0x8] sm:$0xff]  ;;  %s865_s19 = smov 32   ;;  %vm349_vm1 = vcmask 261120  }
  0x1d   : > { %336 = vmatpush.msra.mxu0 %v314_v1  ;;  %v345_v7 = vld [vmem:[#allocation2] sm:$0xff]  ;;  %v430_v10 = vld [vmem:[#allocation5 + $0x18] sm:$0xff]  ;;  %v429_v11 = vld [vmem:[#allocation5 + $0x10] sm:$0xff]  ;;  %s293_s9 = sand.u32 1, %s851_s22   ;;  %s644_s11 = sshll.u32 %s926_s25, 4 }
  0x1e   : > { %s1060_s28 = smov (!%p297_p13, %s627_s28), 3  ;;  %369 = vmatpush.msra.mxu1 %v347_v2  ;;  %646 = vmatpush.msra.mxu3 %v347_v2  ;;  %v1002_v13 = vld [vmem:[%s1050_s5] ss:$0 sm:$0xff]  ;;  %v428_v14 = vld [vmem:[#allocation5 + $0x8] sm:$0xff]  ;;  %s626_s10 = sshll.u32 %s293_s9, 4 }
  0x1f   : > { %s628_s29 = sshll.u32 %s1060_s28, 3  ;;  %337 = vmatpush.msra.mxu0 %v313_v3  ;;  %449 = vmatpush.msra.mxu2 %v430_v10  ;;  %v427_v17 = vld [vmem:[#allocation5] sm:$0xff]  ;;  %s866_s28 = smov 64  }
  0x20   : > { %s300_s13 = scalar_lea.vmem %s1045_s0, %s628_s29  ;;  %s306_s16 = scalar_lea.vmem %s1046_s1, %s628_s29  ;;  %370 = vmatpush.msra.mxu1 %v346_v4  ;;  %647 = vmatpush.msra.mxu3 %v346_v4 }
  0x21   : > { %v309_v5 = vld [vmem:[%s300_s13] sm:$0xff]  ;;  %v991_v8 = vld [vmem:[%s306_s16 + $0x8] sm:$0xff]  ;;  %450 = vmatpush.msra.mxu2 %v429_v11  ;;  %s867_s29 = smov 96   ;;  %s518_s14 = scalar_lea.hbm %s1051_s6, %s644_s11 }
  0x22   : > { %v311_v6 = vld [vmem:[%s306_s16] sm:$0xff]  ;;  %631 = vmatmul.msk.f32.vlgmr.msra.gmra.mxu0 %vm315_vm0, %v309_v5  ;;  %371 = vmatpush.msra.mxu1 %v345_v7  ;;  %v310_v9 = vld [vmem:[%s300_s13 + $0x8] sm:$0xff]  ;;  %s295_s15 = scalar_lea.vmem [#allocation7], %s626_s10  ;;  %s521_s17 = sshll.u32 %s518_s14, 4  ;;  %s522_s17 = int_to_ptr.hbm [resolvable:$true] %s521_s17 }
  0x23   : > { %474 = vrot.lane.b32.xlu1 %v311_v6, %s865_s19  ;;  %648 = vmatpush.msra.mxu3 %v345_v7  ;;  %s519_s16 = sshll.u32 %s295_s15, 4  ;;  %s507_s18 = scalar_lea.sflag [#allocation4], %s293_s9  ;;  %s520_s16 = int_to_ptr.vmem [resolvable:$true] %s519_s16 }
  0x24   : > { %633 = vmatmul.msk.f32.vlgmr.msra.gmra.mxu1 %vm349_vm1, %v311_v6  ;;  %634 = vmatmul.msk.f32.vlgmr.msra.gmra.mxu3 %vm349_vm1, %v991_v8 }
  0x25   : > { %451 = vmatpush.msra.mxu2 %v428_v14 }
  0x27   : > { %452 = vmatpush.msra.mxu2 %v427_v17 }
  0x2a   : > { %632 = vmatmul.msk.f32.gmra.mxu0 %vm315_vm0, %v310_v9 }
  0x2b   : > { %476 = vrot.lane.b32.xlu1 %v991_v8, %s865_s19  ;;  %s803_s19 = sshra.s32 %s522_s17, 4  ;;  %s804_s19 = int_to_ptr.hbm [resolvable:$true] %s803_s19 }
  0x2c   : > { %s805_s25 = scalar_lea.hbm %s804_s19, 16  ;;  %p810_p3 = scmp.lt.s32.totalorder %s804_s19, %s1051_s6 }
  0x2d   : > { %p806_p0 = scmp.ne.s32.totalorder %s804_s19, %s805_s25 }
  0x2f   : > { %p807_p1 = pnand %p806_p0, %p943_p5 }
  0x31   : > { %p808_p2 = pneg %p807_p1 }
  0x95   : > { %v475_v61 = vpop.permute.xlu1 %474 }
  0x9d   : > { %v477_v3 = vpop.permute.xlu1 %476 }
  0x9f   : > { %v339_v12 = vpop.f32.mrf.mxu0 }
  0xa1   : > { %v373_v15 = vpop.f32.mrf.mxu1 }
  0xa2   : > { %v380_v16 = vadd.f32 %v373_v15, %v339_v12 }
  0xa4   : > { %v385_v18 = vadd.f32 %v1002_v13, %v380_v16 }
  0xa6   : > { %v635_v19 = vmul.f32 -1.442695, %v385_v18 }
  0xa7   : > { %v342_v20 = vpop.f32.mrf.mxu0  ;;  %v376_v21 = vpop.f32.mrf.mxu3 }
  0xa8   : > { %717 = vpow2.f32 %v635_v19  ;;  %v381_v22 = vadd.f32 %v376_v21, %v342_v20 }
  0xaa   : > { %v386_v23 = vadd.f32 %v1002_v13, %v381_v22 }
  0xac   : > { %v636_v24 = vmul.f32 -1.442695, %v386_v23 }
  0xae   : > { %v718_v25 = vpop.eup %717  ;;  %719 = vpow2.f32 %v636_v24 }
  0xaf   : > { %v393_v26 = vadd.f32 1.0, %v718_v25 }
  0xb1   : > { %721 = vrcp.f32 %v393_v26  ;;  %v406_v32 = vand.u32 2147483648, %v393_v26  ;;  %v404_v34 = vand.u32 2147483647, %v393_v26  ;;  %vm400_vm3 = vweird.f32 %v393_v26 }
  0xb3   : > { %v407_v38 = vor.u32 1.1754944e-38, %v406_v32  ;;  %vm405_vm5 = vcmp.eq.f32.partialorder %v404_v34, 8.507059e+37 }
  0xb4   : > { %v720_v27 = vpop.eup %719 }
  0xb5   : > { %v394_v28 = vadd.f32 1.0, %v720_v27 }
  0xb7   : > { %v722_v29 = vpop.eup %721  ;;  %723 = vrcp.f32 %v394_v28  ;;  %v421_v42 = vand.u32 2147483648, %v394_v28  ;;  %v419_v45 = vand.u32 2147483647, %v394_v28  ;;  %vm415_vm7 = vweird.f32 %v394_v28 }
  0xb8   : > { %v396_v30 = vmul.f32 %v722_v29, %v393_v26  ;;  %vm401_vm2 = vweird.f32 %v722_v29 }
  0xb9   : > { %vm402_vm4 = vmor %vm400_vm3, %vm401_vm2  ;;  %v422_v47 = vor.u32 1.1754944e-38, %v421_v42  ;;  %vm420_vm9 = vcmp.eq.f32.partialorder %v419_v45, 8.507059e+37 }
  0xba   : > { %v397_v31 = vsub.f32 1.0, %v396_v30 }
  0xbc   : > { %v398_v33 = vmul.f32 %v722_v29, %v397_v31 }
  0xbd   : > { %v724_v35 = vpop.eup %723 }
  0xbe   : > { %v399_v36 = vadd.f32 %v722_v29, %v398_v33  ;;  %v411_v37 = vmul.f32 %v724_v35, %v394_v28  ;;  %vm416_vm6 = vweird.f32 %v724_v35 }
  0xbf   : > { %vm417_vm8 = vmor %vm415_vm7, %vm416_vm6 }
  0xc0   : > { %v403_v39 = vsel %vm402_vm4, %v722_v29, %v399_v36  ;;  %v412_v40 = vsub.f32 1.0, %v411_v37 }
  0xc1   : > { %v408_v41 = vsel %vm405_vm5, %v407_v38, %v403_v39 }
  0xc2   : > { %v425_v43 = vmul.f32 %v408_v41, %v311_v6  ;;  %v413_v44 = vmul.f32 %v724_v35, %v412_v40  ;;  %v482_v62 = vsub.f32 1.0, %v408_v41  ;;  %v480_v0 = vmul.f32 %v475_v61, %v408_v41 }
  0xc4   : > { %637 = vmatmul.msk.f32.vlgmr.msra.gmra.mxu2 %vm349_vm1, %v425_v43  ;;  %v414_v46 = vadd.f32 %v724_v35, %v413_v44 }
  0xc6   : > { %v418_v48 = vsel %vm417_vm8, %v724_v35, %v414_v46 }
  0xc7   : > { %v423_v49 = vsel %vm420_vm9, %v422_v47, %v418_v48 }
  0xc8   : > { %v426_v50 = vmul.f32 %v423_v49, %v991_v8  ;;  %v483_v4 = vsub.f32 1.0, %v423_v49  ;;  %v481_v6 = vmul.f32 %v477_v3, %v423_v49 }
  0xcc   : > { %638 = vmatmul.msk.f32.gmra.mxu2 %vm349_vm1, %v426_v50 }
 0x147   : > { %v454_v51 = vpop.f32.mrf.mxu2 }
 0x148   : > { %462 = vrot.lane.b32.xlu0 %v454_v51, %s866_s28 }
 0x14f   : > { %v457_v52 = vpop.f32.mrf.mxu2 }
 0x150   : > { %464 = vrot.lane.b32.xlu0 %v457_v52, %s866_s28  ;;  %s809_s28 = scalar_lea.hbm %s1051_s6, 32 }
 0x151   : > { %p811_p4 = scmp.lt.s32.totalorder %s809_s28, %s805_s25 }
 0x153   : > { %p812_p7 = por %p811_p4, %p810_p3 }
 0x155   : > { %p813_p8 = pnand %p812_p7, %p808_p2 }
 0x1ba   : > { %v463_v53 = vpop.permute.xlu0 %462 }
 0x1bb   : > { %v468_v54 = vadd.f32 %v463_v53, %v339_v12 }
 0x1bd   : > { %v470_v55 = vadd.f32 %v1002_v13, %v468_v54 }
 0x1bf   : > { %725 = vtanh.f32 %v470_v55 }
 0x1c2   : > { %v465_v56 = vpop.permute.xlu0 %464 }
 0x1c3   : > { %v469_v57 = vadd.f32 %v465_v56, %v342_v20 }
 0x1c5   : > { %v726_v58 = vpop.eup %725  ;;  %v471_v59 = vadd.f32 %v1002_v13, %v469_v57 }
 0x1c6   : > { %486 = vrot.lane.b32.xlu2 %v726_v58, %s867_s29 }
 0x1c7   : > { %727 = vtanh.f32 %v471_v59 }
 0x1cd   : > { %v728_v60 = vpop.eup %727 }
 0x1ce   : > { %488 = vrot.lane.b32.xlu2 %v728_v60, %s867_s29 }
 0x220   : > { %v487_v63 = vpop.permute.xlu2 %486 }
 0x221   : > { %v492_v1 = vmul.f32 %v487_v63, %v482_v62 }
 0x223   : > { %v494_v2 = vadd.f32 %v492_v1, %v480_v0 }
 0x225   : > { %498 = vrot.lane.b32.xlu0 %v494_v2, %s867_s29 }
 0x228   : > { %v489_v5 = vpop.permute.xlu2 %488 }
 0x229   : > { %v493_v7 = vmul.f32 %v489_v5, %v483_v4 }
 0x22b   : > { %v495_v8 = vadd.f32 %v493_v7, %v481_v6 }
 0x22d   : > { %500 = vrot.lane.b32.xlu1 %v495_v8, %s867_s29 }
 0x297   : > { %v499_v9 = vpop.permute.xlu0 %498 }
 0x298   : > { %504 = vst.msk [vmem:[%s295_s15] sm:$0xff] %vm349_vm1, %v499_v9 }
 0x29f   : > { %v501_v10 = vpop.permute.xlu1 %500 }
 0x2a0   : > { %505 = vst.msk [vmem:[%s295_s15 + $0x8] sm:$0xff] %vm349_vm1, %v501_v10 }
 0x2a1   : > { %816 = shalt.err (!%p813_p8)
}
 0x2a2   : > { %s868_s9 = smov 128   ;;  %s869_s11 = smov 8  }
 0x2a3   : > { %657 = dma.vmem_to_hbm [thread:$0]  (%p943_p5), %s520_s16, 256, %s522_s17, %s507_s18, %s868_s9, %s868_s9, %s869_s11  }
 0x2a4 PF: > { %p674_p9 = scmp.ge.s32.totalorder %s859_s24, 2  ;;  %s536_s12 = sand.u32 1, %s847_s21  }
 0x2a5   : > { %s537_s13 = scalar_lea.sflag [#allocation4], %s536_s12 }
 0x2a6   : > { %p667_p10 = pnand %p674_p9, %p947_p6 }
 0x2a8   : > { %p668_p11 = pneg %p667_p10 }
 0x2aa   : > { %842 = dma.done.wait (%p668_p11), %s537_s13, 256  }
 0x2ab   : > { %844 = vsyncadd (%p668_p11), %s537_s13, 4294967040  ;;  %p18_p12 = scmp.ge.s32.totalorder %s930_s27, 4   ;;  %s1055_s21 = smov %s851_s22 }
 0x2ac   : > { %s1056_s22 = smov %s855_s23  ;;  %s1057_s23 = smov %s941_s30 }
 0x2ad   : > { %s1058_s24 = smov %s930_s27  ;;  %20 = sbr.rel (!%p18_p12) target bundleno = 5 (0x5), region = 91 }
 0x2b2   :  { %543 = vsyncpa [#allocation3], 1 }
 0x2b3   :  { %545 = vsyncpa [#allocation3 + $0x1], 1 }
 0x2b4   :  { %546 = vsyncpa [#allocation6], 1 }
 0x2b5   :  { %547 = vsyncpa [#allocation4], 1 }
 0x2b6   :  { %549 = vsyncpa [#allocation4 + $0x1], 1 }

</bundles_post_ra>
